<compile_context>
chip_gen: v5e
topology: v5e:2x2
jax: 0.10.0
libtpu: 0.0.40
codegen_flags: <defaults>
</compile_context>

<pallas_src>
import jax
import jax.numpy as jnp
from jax import lax
from jax.experimental import pallas as pl
from jax.experimental.pallas import tpu as pltpu

HIDDEN = 256


def _critic_kernel(s_ref, a_ref, w1_ref, b1_ref, w2_ref, b2_ref,
                   w3_ref, b3_ref, o_ref):
    cdt = w1_ref.dtype                       # compute dtype for the MXU (bf16)

    # Fused concat (lane axis) -> single layer-1 MXU pass.
    sa = jnp.concatenate([s_ref[...], a_ref[...]], axis=1).astype(cdt)  # (tb, S+A)

    # layer 1: (tb, S+A) @ (S+A, 256), f32 accumulate, ReLU on the VPU.
    h1 = jnp.dot(sa, w1_ref[...], preferred_element_type=jnp.float32) + b1_ref[...]
    h1 = jnp.maximum(h1, 0.0).astype(cdt)

    # layer 2: (tb, 256) @ (256, 256)
    h2 = jnp.dot(h1, w2_ref[...], preferred_element_type=jnp.float32) + b2_ref[...]
    h2 = jnp.maximum(h2, 0.0).astype(cdt)

    # layer 3 in transposed orientation: (1, 256) x (tb, 256)^T -> (1, tb).
    # Same contraction pattern as q @ k^T in attention kernels; the result row
    # is lane-dense, so the output store is unmasked full-lane vst.
    q = lax.dot_general(w3_ref[...], h2,
                        dimension_numbers=(((1,), (1,)), ((), ())),
                        preferred_element_type=jnp.float32)
    q = q + b3_ref[...]                       # (1, tb) + (1, 1)
    o_ref[...] = q[None].astype(o_ref.dtype)  # (1, 1, tb)


def _pick_batch_tile(B, block_b):
    """256-aligned batch tile.  Guarantees >=2 grid steps for B > 256 so the
    'parallel' batch axis can shard across both TensorCores on v7x."""
    block_b = max(256, (block_b // 256) * 256)
    if B <= 256:
        return B                              # single tile == full array dims
    half = -(-B // 2)                         # cdiv(B, 2)
    half_rounded = ((half + 255) // 256) * 256
    return min(block_b, half_rounded)


def critic_forward(state, action, params, *, block_b=2048):
    """state: (B, state_dim) f32, action: (B, action_dim) f32 -> q: (B, 1) f32."""
    w1, b1, w2, b2, w3, b3 = params
    B, state_dim = state.shape
    action_dim = action.shape[1]
    hidden = w2.shape[0]

    tb = _pick_batch_tile(B, block_b)
    num_tiles = pl.cdiv(B, tb)
    grid = (num_tiles,)

    # Advisory cost estimate for XLA scheduling around this small call.
    in_dim = state_dim + action_dim
    flops = 2 * B * (in_dim * hidden + hidden * hidden + hidden)
    bytes_weights = sum(int(p.size) * p.dtype.itemsize
                        for p in (w1, b1, w2, b2, w3, b3))
    bytes_act = (int(state.size) * state.dtype.itemsize
                 + int(action.size) * action.dtype.itemsize
                 + num_tiles * tb * 4)
    cost = pl.CostEstimate(flops=flops, transcendentals=0,
                           bytes_accessed=bytes_weights + bytes_act)

    def act_spec(d):
        return pl.BlockSpec((tb, d), lambda i: (i, 0))

    def const_spec(shape):
        # Same block index every grid step -> DMA'd once, stays VMEM-resident.
        return pl.BlockSpec(shape, lambda i: (0, 0))

    q_rows = pl.pallas_call(
        _critic_kernel,
        out_shape=jax.ShapeDtypeStruct((num_tiles, 1, tb), jnp.float32),
        grid_spec=pltpu.PrefetchScalarGridSpec(
            num_scalar_prefetch=0,
            grid=grid,
            in_specs=[
                act_spec(state_dim),          # state tile  (tb, S) f32
                act_spec(action_dim),         # action tile (tb, A) f32
                const_spec(w1.shape),         # W1 (S+A, H) bf16
                const_spec(b1.shape),         # b1 (1, H)   f32
                const_spec(w2.shape),         # W2 (H, H)   bf16
                const_spec(b2.shape),         # b2 (1, H)   f32
                const_spec(w3.shape),         # W3 (1, H)   bf16
                const_spec(b3.shape),         # b3 (1, 1)   f32
            ],
            out_specs=pl.BlockSpec((1, 1, tb), lambda i: (i, 0, 0)),
        ),
        compiler_params=pltpu.CompilerParams(
            dimension_semantics=("parallel",),
            vmem_limit_bytes=32 * 1024 * 1024),
        cost_estimate=cost,
    )(state, action, w1, b1, w2, b2, w3, b3)

    # Lane-dense slab back to (B, 1); padded tail rows (if any) are dropped.
    return q_rows.reshape(num_tiles * tb)[:B].reshape(B, 1)


def init_critic_params(key, state_dim, action_dim, *, hidden=HIDDEN,
                       weight_dtype=jnp.bfloat16):
    """nn.Linear-style init (uniform +/- 1/sqrt(fan_in)); weights cast to bf16,
    W3 stored transposed as (1, hidden) for the lane-dense layer-3 dot."""
    k = jax.random.split(key, 6)

    def lin(kw, kb, fan_in, fan_out):
        bound = 1.0 / jnp.sqrt(float(fan_in))
        w = jax.random.uniform(kw, (fan_in, fan_out), jnp.float32, -bound, bound)
        b = jax.random.uniform(kb, (1, fan_out), jnp.float32, -bound, bound)
        return w, b

    in_dim = state_dim + action_dim
    w1, b1 = lin(k[0], k[1], in_dim, hidden)
    w2, b2 = lin(k[2], k[3], hidden, hidden)
    w3, b3 = lin(k[4], k[5], hidden, 1)

    return (w1.astype(weight_dtype), b1,
            w2.astype(weight_dtype), b2,
            w3.T.astype(weight_dtype),     # (1, hidden)
            b3)                            # (1, 1)


def critic_reference(state, action, params):
    """Plain-JAX reference with the same precision path (bf16 weights and
    activations at the MXU boundaries, f32 accumulation)."""
    w1, b1, w2, b2, w3, b3 = params
    cdt = w1.dtype
    sa = jnp.concatenate([state, action], axis=1).astype(cdt)
    h1 = jnp.maximum(jnp.dot(sa, w1, preferred_element_type=jnp.float32) + b1, 0.0)
    h1 = h1.astype(cdt)
    h2 = jnp.maximum(jnp.dot(h1, w2, preferred_element_type=jnp.float32) + b2, 0.0)
    h2 = h2.astype(cdt)
    q = jnp.dot(h2, w3.T, preferred_element_type=jnp.float32) + b3
    return q


if __name__ == "__main__":
    key = jax.random.PRNGKey(0)
    k_state, k_action, k_params, k_state2, k_action2 = jax.random.split(key, 5)

    batch, state_dim, action_dim = 2, 16, 8
    state = jax.random.normal(k_state, (batch, state_dim), jnp.float32)
    action = jax.random.normal(k_action, (batch, action_dim), jnp.float32)
    params = init_critic_params(k_params, state_dim, action_dim)

    # Small case: single tile (tb == B).
    q = critic_forward(state, action, params)
    jax.block_until_ready(q)
    q_ref = critic_reference(state, action, params)
    assert q.shape == (batch, 1)
    assert jnp.allclose(q, q_ref, atol=1e-4, rtol=1e-3)

    # Multi-tile case: 2 grid steps (v7x megacore path) with a partial last
    # tile (600 = 512 + 88) and the lane-dense output reshape.
    batch2 = 600
    state2 = jax.random.normal(k_state2, (batch2, state_dim), jnp.float32)
    action2 = jax.random.normal(k_action2, (batch2, action_dim), jnp.float32)
    q2 = critic_forward(state2, action2, params, block_b=512)
    jax.block_until_ready(q2)
    q2_ref = critic_reference(state2, action2, params)
    assert q2.shape == (batch2, 1)
    assert jnp.allclose(q2, q2_ref, atol=1e-4, rtol=1e-3)

    print("KERNEL_OK")
</pallas_src>

<mosaic_0001>
module attributes {stable_mosaic.version = 11 : i64} {
  func.func @_critic_kernel(%arg0: i32, %arg1: memref<2x16xf32, #tpu.memory_space<vmem>>, %arg2: memref<2x8xf32, #tpu.memory_space<vmem>>, %arg3: memref<24x256xbf16, #tpu.memory_space<vmem>>, %arg4: memref<1x256xf32, #tpu.memory_space<vmem>>, %arg5: memref<256x256xbf16, #tpu.memory_space<vmem>>, %arg6: memref<1x256xf32, #tpu.memory_space<vmem>>, %arg7: memref<1x256xbf16, #tpu.memory_space<vmem>>, %arg8: memref<1x1xf32, #tpu.memory_space<vmem>>, %arg9: memref<1x1x2xf32, #tpu.memory_space<vmem>>) attributes {dimension_semantics = [#tpu.dimension_semantics<parallel>], iteration_bounds = array<i64: 1>, scalar_prefetch = 0 : i64, scratch_operands = 0 : i64, tpu.core_type = #tpu.core_type<tc>, window_params = [{transform_indices = @transform_0, window_bounds = array<i64: 2, 16>}, {transform_indices = @transform_1, window_bounds = array<i64: 2, 8>}, {pipeline_mode = #tpu.pipeline_mode<synchronous>, transform_indices = @transform_2, window_bounds = array<i64: 24, 256>}, {pipeline_mode = #tpu.pipeline_mode<synchronous>, transform_indices = @transform_3, window_bounds = array<i64: 1, 256>}, {pipeline_mode = #tpu.pipeline_mode<synchronous>, transform_indices = @transform_4, window_bounds = array<i64: 256, 256>}, {pipeline_mode = #tpu.pipeline_mode<synchronous>, transform_indices = @transform_5, window_bounds = array<i64: 1, 256>}, {pipeline_mode = #tpu.pipeline_mode<synchronous>, transform_indices = @transform_6, window_bounds = array<i64: 1, 256>}, {pipeline_mode = #tpu.pipeline_mode<synchronous>, transform_indices = @transform_7, window_bounds = array<i64: 1, 1>}, {transform_indices = @transform_8, window_bounds = array<i64: 1, 1, 2>}]} {
    %c0 = arith.constant 0 : index
    %c0_0 = arith.constant 0 : index
    %0 = vector.load %arg1[%c0, %c0_0] : memref<2x16xf32, #tpu.memory_space<vmem>>, vector<2x16xf32>
    %c0_1 = arith.constant 0 : index
    %c0_2 = arith.constant 0 : index
    %1 = vector.load %arg2[%c0_1, %c0_2] : memref<2x8xf32, #tpu.memory_space<vmem>>, vector<2x8xf32>
    %2 = tpu.concatenate %0, %1 in 1 : vector<2x16xf32>, vector<2x8xf32> -> vector<2x24xf32>
    %3 = arith.truncf %2 : vector<2x24xf32> to vector<2x24xbf16>
    %c0_3 = arith.constant 0 : index
    %c0_4 = arith.constant 0 : index
    %4 = vector.load %arg3[%c0_3, %c0_4] : memref<24x256xbf16, #tpu.memory_space<vmem>>, vector<24x256xbf16>
    %cst = arith.constant dense<0.000000e+00> : vector<2x256xf32>
    %5 = tpu.matmul %3, %4, %cst {dimension_numbers = #tpu.dot_dimension_numbers<[1], [0], [0], [1], [0, 0, 1, 1], [], []>} : vector<2x24xbf16>, vector<24x256xbf16>, vector<2x256xf32> -> vector<2x256xf32>
    %c0_5 = arith.constant 0 : index
    %c0_6 = arith.constant 0 : index
    %6 = vector.load %arg4[%c0_5, %c0_6] : memref<1x256xf32, #tpu.memory_space<vmem>>, vector<1x256xf32>
    %7 = vector.broadcast %6 : vector<1x256xf32> to vector<2x256xf32>
    %8 = arith.addf %5, %7 : vector<2x256xf32>
    %cst_7 = arith.constant 0.000000e+00 : f32
    %9 = vector.broadcast %cst_7 : f32 to vector<2x256xf32>
    %10 = arith.maximumf %8, %9 : vector<2x256xf32>
    %11 = arith.truncf %10 : vector<2x256xf32> to vector<2x256xbf16>
    %c0_8 = arith.constant 0 : index
    %c0_9 = arith.constant 0 : index
    %12 = vector.load %arg5[%c0_8, %c0_9] : memref<256x256xbf16, #tpu.memory_space<vmem>>, vector<256x256xbf16>
    %cst_10 = arith.constant dense<0.000000e+00> : vector<2x256xf32>
    %13 = tpu.matmul %11, %12, %cst_10 {dimension_numbers = #tpu.dot_dimension_numbers<[1], [0], [0], [1], [0, 0, 1, 1], [], []>} : vector<2x256xbf16>, vector<256x256xbf16>, vector<2x256xf32> -> vector<2x256xf32>
    %c0_11 = arith.constant 0 : index
    %c0_12 = arith.constant 0 : index
    %14 = vector.load %arg6[%c0_11, %c0_12] : memref<1x256xf32, #tpu.memory_space<vmem>>, vector<1x256xf32>
    %15 = vector.broadcast %14 : vector<1x256xf32> to vector<2x256xf32>
    %16 = arith.addf %13, %15 : vector<2x256xf32>
    %cst_13 = arith.constant 0.000000e+00 : f32
    %17 = vector.broadcast %cst_13 : f32 to vector<2x256xf32>
    %18 = arith.maximumf %16, %17 : vector<2x256xf32>
    %19 = arith.truncf %18 : vector<2x256xf32> to vector<2x256xbf16>
    %c0_14 = arith.constant 0 : index
    %c0_15 = arith.constant 0 : index
    %20 = vector.load %arg7[%c0_14, %c0_15] : memref<1x256xbf16, #tpu.memory_space<vmem>>, vector<1x256xbf16>
    %cst_16 = arith.constant dense<0.000000e+00> : vector<1x2xf32>
    %21 = tpu.matmul %20, %19, %cst_16 {dimension_numbers = #tpu.dot_dimension_numbers<[1], [1], [0], [0], [0, 0, 1, 0], [], []>} : vector<1x256xbf16>, vector<2x256xbf16>, vector<1x2xf32> -> vector<1x2xf32>
    %c0_17 = arith.constant 0 : index
    %c0_18 = arith.constant 0 : index
    %22 = vector.load %arg8[%c0_17, %c0_18] : memref<1x1xf32, #tpu.memory_space<vmem>>, vector<1x1xf32>
    %23 = vector.broadcast %22 : vector<1x1xf32> to vector<1x2xf32>
    %24 = arith.addf %21, %23 : vector<1x2xf32>
    %25 = vector.shape_cast %24 : vector<1x2xf32> to vector<1x1x2xf32>
    %c0_19 = arith.constant 0 : index
    %c0_20 = arith.constant 0 : index
    %c0_21 = arith.constant 0 : index
    %26 = vector.load %arg9[%c0_19, %c0_20, %c0_21] : memref<1x1x2xf32, #tpu.memory_space<vmem>>, vector<1x1x2xf32>
    tpu.vector_store %arg9[%c0_19, %c0_20, %c0_21], %25 {strides = array<i32>} : memref<1x1x2xf32, #tpu.memory_space<vmem>>, vector<1x1x2xf32>,
    return
  }
  func.func @transform_0(%arg0: i32) -> (i32, i32) {
    %c0_i32 = arith.constant 0 : i32
    %c0_i32_0 = arith.constant 0 : i32
    return %arg0, %c0_i32 : i32, i32
  }
  func.func @transform_1(%arg0: i32) -> (i32, i32) {
    %c0_i32 = arith.constant 0 : i32
    %c0_i32_0 = arith.constant 0 : i32
    return %arg0, %c0_i32 : i32, i32
  }
  func.func @transform_2(%arg0: i32) -> (i32, i32) {
    %c0_i32 = arith.constant 0 : i32
    %c0_i32_0 = arith.constant 0 : i32
    %c0_i32_1 = arith.constant 0 : i32
    return %c0_i32, %c0_i32_0 : i32, i32
  }
  func.func @transform_3(%arg0: i32) -> (i32, i32) {
    %c0_i32 = arith.constant 0 : i32
    %c0_i32_0 = arith.constant 0 : i32
    %c0_i32_1 = arith.constant 0 : i32
    return %c0_i32, %c0_i32_0 : i32, i32
  }
  func.func @transform_4(%arg0: i32) -> (i32, i32) {
    %c0_i32 = arith.constant 0 : i32
    %c0_i32_0 = arith.constant 0 : i32
    %c0_i32_1 = arith.constant 0 : i32
    return %c0_i32, %c0_i32_0 : i32, i32
  }
  func.func @transform_5(%arg0: i32) -> (i32, i32) {
    %c0_i32 = arith.constant 0 : i32
    %c0_i32_0 = arith.constant 0 : i32
    %c0_i32_1 = arith.constant 0 : i32
    return %c0_i32, %c0_i32_0 : i32, i32
  }
  func.func @transform_6(%arg0: i32) -> (i32, i32) {
    %c0_i32 = arith.constant 0 : i32
    %c0_i32_0 = arith.constant 0 : i32
    %c0_i32_1 = arith.constant 0 : i32
    return %c0_i32, %c0_i32_0 : i32, i32
  }
  func.func @transform_7(%arg0: i32) -> (i32, i32) {
    %c0_i32 = arith.constant 0 : i32
    %c0_i32_0 = arith.constant 0 : i32
    %c0_i32_1 = arith.constant 0 : i32
    return %c0_i32, %c0_i32_0 : i32, i32
  }
  func.func @transform_8(%arg0: i32) -> (i32, i32, i32) {
    %c0_i32 = arith.constant 0 : i32
    %c0_i32_0 = arith.constant 0 : i32
    %c0_i32_1 = arith.constant 0 : i32
    return %arg0, %c0_i32, %c0_i32_0 : i32, i32, i32
  }
}

</mosaic_0001>

<bundles_post_ra>
// kernel: tpu_custom_call.1
= control target key start
LH: loop header
LB: loop body
LE: loop exit
PB: predicated region body
PF: predicated region fallthrough
CT: control target
= control target key end

     0   :  { %s872_s0 = inlined_call_operand.vmem [shape: f32[2,16], index: 0, kind: input, shape index: {}]   ;;  %s873_s1 = inlined_call_operand.hbm [shape: f32[2,8], index: 1, kind: input, shape index: {}]   ;;  %s874_s2 = inlined_call_operand.hbm [shape: bf16[24,256], index: 2, kind: input, shape index: {}]   ;;  %s875_s3 = inlined_call_operand.vmem [shape: f32[1,256], index: 3, kind: input, shape index: {}]   ;;  %s876_s4 = inlined_call_operand.hbm [shape: bf16[256,256], index: 4, kind: input, shape index: {}]   ;;  %s877_s5 = inlined_call_operand.vmem [shape: f32[1,256], index: 5, kind: input, shape index: {}]   ;;  %s878_s6 = inlined_call_operand.hbm [shape: bf16[1,256], index: 6, kind: input, shape index: {}]   ;;  %s879_s7 = inlined_call_operand.<no memory space> [shape: f32[1,1], index: 7, kind: input, shape index: {}]   ;;  %s880_s8 = inlined_call_operand.hbm [shape: f32[1,1,2], index: 8, kind: output, shape index: {}]  }
   0x1   :  { %v13_v0 = vstv %s879_s7 }
   0x2   :  { %14 = vst [vmem:[#allocation2] sm:$0x1] %v13_v0 }
   0x3   :  { %15 = vsyncpa [#allocation4], 0 }
   0x4   :  { %16 = vsyncpa [#allocation7], 0 }
   0x5   :  { %17 = vsyncpa [#allocation10], 0  ;;  %s36_s9 = sshll.u32 %s874_s2, 4  ;;  %s37_s9 = int_to_ptr.hbm [resolvable:$true] %s36_s9 }
   0x6   :  { %18 = vsyncpa [#allocation5], 0  ;;  %s791_s10 = smov [#allocation6]   ;;  %s26_s14 = sshll.u32 %s873_s1, 4  ;;  %s27_s14 = int_to_ptr.hbm [resolvable:$true] %s26_s14 }
   0x7   :  { %s38_s11 = sshll.u32 %s791_s10, 4  ;;  %s792_s15 = smov 128   ;;  %s39_s11 = int_to_ptr.vmem [resolvable:$true] %s38_s11 }
   0x8   :  { %s793_s16 = smov 8   ;;  %s794_s7 = smov [#allocation3]  }
   0x9   :  { %44 = dma.hbm_to_vmem [thread:$0]  %s37_s9, 384, %s39_s11, [#allocation7], %s792_s15, %s792_s15, %s793_s16  }
   0xa   :  { %s28_s17 = sshll.u32 %s794_s7, 4  ;;  %s51_s20 = sshll.u32 %s876_s4, 4  ;;  %s29_s17 = int_to_ptr.vmem [resolvable:$true] %s28_s17  ;;  %s52_s20 = int_to_ptr.hbm [resolvable:$true] %s51_s20 }
   0xb   :  { %31 = dma.hbm_to_vmem [thread:$0]  %s27_s14, 32, %s29_s17, [#allocation4]  }
   0xc   :  { %s67_s22 = sshll.u32 %s878_s6, 4  ;;  %s795_s23 = smov [#allocation8]   ;;  %s68_s22 = int_to_ptr.hbm [resolvable:$true] %s67_s22 }
   0xd   :  { %s53_s24 = sshll.u32 %s795_s23, 4  ;;  %s796_s1 = smov [#allocation9]   ;;  %s54_s24 = int_to_ptr.vmem [resolvable:$true] %s53_s24 }
   0xe   :  { %59 = dma.hbm_to_vmem [thread:$0]  %s52_s20, 4096, %s54_s24, [#allocation7], %s792_s15, %s792_s15, %s793_s16  }
   0xf   :  { %s69_s25 = sshll.u32 %s796_s1, 4  ;;  %s70_s25 = int_to_ptr.vmem [resolvable:$true] %s69_s25 }
  0x10   :  { %72 = dma.hbm_to_vmem [thread:$0]  %s68_s22, 32, %s70_s25, [#allocation10]  }
  0x11   :  { %783 = dma.done.wait [#allocation4], 32  }
  0x12   :  { %784 = vsyncadd [#allocation4], 4294967264 }
  0x13   :  { %785 = dma.done.wait [#allocation7], 4480  }
  0x14   :  { %786 = vsyncadd [#allocation7], 4294962816 }
  0x15   :  { %787 = dma.done.wait [#allocation10], 32  }
  0x16   :  { %788 = vsyncadd [#allocation10], 4294967264  ;;  %v93_v1 = vld [vmem:[#allocation3] sm:$0x3]  ;;  %v103_v2 = vld [vmem:[#allocation6 + $0x10] sm:$0xff]  ;;  %s797_s4 = smov 16  }
  0x17   :  { %95 = vrot.lane.b32.xlu0 %v93_v1, %s797_s4  ;;  %v117_v3 = vunpack.c.l.b16 %v103_v2  ;;  %v118_v4 = vunpack.c.h.b16 %v103_v2  ;;  %vm129_vm0 = vcmask 1043456   ;;  %v483_v9 = vld [vmem:[#allocation6] sm:$0xf]  ;;  %v620_v10 = vld [vmem:[#allocation6 + $0x4] sm:$0xf0]  ;;  %vm98_vm1 = vcmask 130048  }
  0x18   :  { %v619_v11 = vld [vmem:[#allocation6 + $0x4] sm:$0xf]  ;;  %v484_v12 = vor.u32 %v620_v10, %v483_v9  ;;  %v485_v13 = vld [vmem:[#allocation6 + $0x8] sm:$0xf0]  ;;  %v549_v15 = vld [vmem:[#allocation8 + $0x70] sm:$0xf] }
  0x19   :  { %v121_v5 = vpack.c.b16 %v117_v3, %v117_v3  ;;  %v122_v6 = vpack.c.b16 %v118_v4, %v118_v4  ;;  %v488_v14 = vor.u32 %v619_v11, %v485_v13  ;;  %v636_v16 = vld [vmem:[#allocation8 + $0x74] sm:$0xf0]  ;;  %v613_v17 = vld [vmem:[#allocation8 + $0xf0] sm:$0xf]  ;;  %v635_v20 = vld [vmem:[#allocation8 + $0x74] sm:$0xf] }
  0x1a   :  { %v550_v18 = vor.u32 %v636_v16, %v549_v15  ;;  %v652_v19 = vld [vmem:[#allocation8 + $0xf4] sm:$0xf0]  ;;  %v551_v21 = vld [vmem:[#allocation8 + $0x78] sm:$0xf0]  ;;  %v651_v24 = vld [vmem:[#allocation8 + $0xf4] sm:$0xf] }
  0x1b   :  { %v131_v7 = vsel %vm129_vm0, %v121_v5, 0  ;;  %v134_v8 = vsel %vm129_vm0, %v122_v6, 0  ;;  %v614_v22 = vor.u32 %v652_v19, %v613_v17  ;;  %v554_v23 = vor.u32 %v635_v20, %v551_v21  ;;  %v615_v25 = vld [vmem:[#allocation8 + $0xf8] sm:$0xf0]  ;;  %v541_v26 = vld [vmem:[#allocation8 + $0x60] sm:$0xf] }
  0x1c   :  { %142 = vmatpush.bf16.msra.mxu0 %v131_v7  ;;  %155 = vmatpush.bf16.msra.mxu1 %v134_v8  ;;  %v618_v27 = vor.u32 %v651_v24, %v615_v25  ;;  %v634_v28 = vld [vmem:[#allocation8 + $0x64] sm:$0xf0]  ;;  %v605_v29 = vld [vmem:[#allocation8 + $0xe0] sm:$0xf]  ;;  %v633_v33 = vld [vmem:[#allocation8 + $0x64] sm:$0xf] }
  0x1d   :  { %364 = vmatpush.bf16.msra.mxu2 %v550_v18  ;;  %v650_v30 = vld [vmem:[#allocation8 + $0xe4] sm:$0xf0]  ;;  %377 = vmatpush.bf16.msra.mxu3 %v614_v22  ;;  %v542_v31 = vor.u32 %v634_v28, %v541_v26  ;;  %v543_v34 = vld [vmem:[#allocation8 + $0x68] sm:$0xf0]  ;;  %v649_v35 = vld [vmem:[#allocation8 + $0xe4] sm:$0xf] }
  0x1e   :  { %v606_v32 = vor.u32 %v650_v30, %v605_v29  ;;  %v546_v36 = vor.u32 %v633_v33, %v543_v34  ;;  %v607_v37 = vld [vmem:[#allocation8 + $0xe8] sm:$0xf0]  ;;  %v533_v38 = vld [vmem:[#allocation8 + $0x50] sm:$0xf]  ;;  %v632_v39 = vld [vmem:[#allocation8 + $0x54] sm:$0xf0] }
  0x1f   :  { %v610_v40 = vor.u32 %v649_v35, %v607_v37  ;;  %v597_v41 = vld [vmem:[#allocation8 + $0xd0] sm:$0xf]  ;;  %v648_v42 = vld [vmem:[#allocation8 + $0xd4] sm:$0xf0]  ;;  %v631_v43 = vld [vmem:[#allocation8 + $0x54] sm:$0xf]  ;;  %v534_v44 = vor.u32 %v632_v39, %v533_v38 }
  0x20   :  { %143 = vmatpush.bf16.msra.mxu0 %v484_v12  ;;  %156 = vmatpush.bf16.msra.mxu1 %v488_v14  ;;  %v535_v45 = vld [vmem:[#allocation8 + $0x58] sm:$0xf0]  ;;  %v647_v46 = vld [vmem:[#allocation8 + $0xd4] sm:$0xf]  ;;  %v598_v48 = vor.u32 %v648_v42, %v597_v41  ;;  %v525_v50 = vld [vmem:[#allocation8 + $0x40] sm:$0xf] }
  0x21   :  { %365 = vmatpush.bf16.msra.mxu2 %v542_v31  ;;  %v599_v47 = vld [vmem:[#allocation8 + $0xd8] sm:$0xf0]  ;;  %378 = vmatpush.bf16.msra.mxu3 %v606_v32  ;;  %v538_v49 = vor.u32 %v631_v43, %v535_v45  ;;  %v630_v51 = vld [vmem:[#allocation8 + $0x44] sm:$0xf0]  ;;  %v589_v52 = vld [vmem:[#allocation8 + $0xc0] sm:$0xf] }
  0x22   :  { %v602_v53 = vor.u32 %v647_v46, %v599_v47  ;;  %v646_v54 = vld [vmem:[#allocation8 + $0xc4] sm:$0xf0]  ;;  %v629_v55 = vld [vmem:[#allocation8 + $0x44] sm:$0xf]  ;;  %v527_v56 = vld [vmem:[#allocation8 + $0x48] sm:$0xf0]  ;;  %v526_v59 = vor.u32 %v630_v51, %v525_v50 }
  0x23   :  { %v645_v57 = vld [vmem:[#allocation8 + $0xc4] sm:$0xf]  ;;  %v591_v58 = vld [vmem:[#allocation8 + $0xc8] sm:$0xf0]  ;;  %v590_v60 = vor.u32 %v646_v54, %v589_v52  ;;  %v530_v61 = vor.u32 %v629_v55, %v527_v56  ;;  %v517_v62 = vld [vmem:[#allocation8 + $0x30] sm:$0xf] }
  0x24   :  { %390 = vmatpush.bf16.msrb.mxu0 %v554_v23  ;;  %403 = vmatpush.bf16.msrb.mxu1 %v618_v27  ;;  %v628_v63 = vld [vmem:[#allocation8 + $0x34] sm:$0xf0]  ;;  %v581_v0 = vld [vmem:[#allocation8 + $0xb0] sm:$0xf]  ;;  %v594_v1 = vor.u32 %v645_v57, %v591_v58  ;;  %v627_v3 = vld [vmem:[#allocation8 + $0x34] sm:$0xf] }
  0x25   :  { %366 = vmatpush.bf16.msra.mxu2 %v534_v44  ;;  %379 = vmatpush.bf16.msra.mxu3 %v598_v48  ;;  %v644_v2 = vld [vmem:[#allocation8 + $0xb4] sm:$0xf0]  ;;  %v519_v4 = vld [vmem:[#allocation8 + $0x38] sm:$0xf0]  ;;  %v643_v5 = vld [vmem:[#allocation8 + $0xb4] sm:$0xf]  ;;  %v518_v7 = vor.u32 %v628_v63, %v517_v62 }
  0x26   :  { %v583_v6 = vld [vmem:[#allocation8 + $0xb8] sm:$0xf0]  ;;  %v582_v8 = vor.u32 %v644_v2, %v581_v0  ;;  %v522_v9 = vor.u32 %v627_v3, %v519_v4  ;;  %v509_v10 = vld [vmem:[#allocation8 + $0x20] sm:$0xf]  ;;  %v626_v11 = vld [vmem:[#allocation8 + $0x24] sm:$0xf0] }
  0x27   :  { %v573_v12 = vld [vmem:[#allocation8 + $0xa0] sm:$0xf]  ;;  %v586_v13 = vor.u32 %v643_v5, %v583_v6  ;;  %v642_v14 = vld [vmem:[#allocation8 + $0xa4] sm:$0xf0]  ;;  %v625_v15 = vld [vmem:[#allocation8 + $0x24] sm:$0xf]  ;;  %v510_v19 = vor.u32 %v626_v11, %v509_v10 }
  0x28   :  { %391 = vmatpush.bf16.msrb.mxu0 %v546_v36  ;;  %404 = vmatpush.bf16.msrb.mxu1 %v610_v40  ;;  %v511_v16 = vld [vmem:[#allocation8 + $0x28] sm:$0xf0]  ;;  %v641_v17 = vld [vmem:[#allocation8 + $0xa4] sm:$0xf]  ;;  %v574_v20 = vor.u32 %v642_v14, %v573_v12  ;;  %v92_v23 = vld [vmem:[%s872_s0] sm:$0x3] }
  0x29   :  { %367 = vmatpush.bf16.msra.mxu2 %v526_v59  ;;  %380 = vmatpush.bf16.msra.mxu3 %v590_v60  ;;  %v575_v18 = vld [vmem:[#allocation8 + $0xa8] sm:$0xf0]  ;;  %v514_v21 = vor.u32 %v625_v15, %v511_v16  ;;  %vm125_vm2 = vcmask 195584   ;;  %v501_v27 = vld [vmem:[#allocation8 + $0x10] sm:$0xf]  ;;  %v798_v2 = vmov 0  }
  0x2a   :  { %v578_v22 = vor.u32 %v641_v17, %v575_v18  ;;  %v624_v28 = vld [vmem:[#allocation8 + $0x14] sm:$0xf0]  ;;  %v565_v29 = vld [vmem:[#allocation8 + $0x90] sm:$0xf]  ;;  %v623_v32 = vld [vmem:[#allocation8 + $0x14] sm:$0xf]  ;;  %662 = vset.pattern.permute.xlu0 %v798_v2 }
  0x2b   :  { %v502_v30 = vor.u32 %v624_v28, %v501_v27  ;;  %v640_v31 = vld [vmem:[#allocation8 + $0x94] sm:$0xf0]  ;;  %v503_v33 = vld [vmem:[#allocation8 + $0x18] sm:$0xf0]  ;;  %v639_v36 = vld [vmem:[#allocation8 + $0x94] sm:$0xf] }
  0x2c   :  { %392 = vmatpush.bf16.msrb.mxu0 %v538_v49  ;;  %405 = vmatpush.bf16.msrb.mxu1 %v602_v53  ;;  %v566_v34 = vor.u32 %v640_v31, %v565_v29  ;;  %v506_v35 = vor.u32 %v623_v32, %v503_v33  ;;  %v567_v37 = vld [vmem:[#allocation8 + $0x98] sm:$0xf0]  ;;  %v493_v39 = vld [vmem:[#allocation8] sm:$0xf]  ;;  %v622_v40 = vld [vmem:[#allocation8 + $0x4] sm:$0xf0] }
  0x2d   :  { %368 = vmatpush.bf16.msra.mxu2 %v518_v7  ;;  %381 = vmatpush.bf16.msra.mxu3 %v582_v8  ;;  %v570_v38 = vor.u32 %v639_v36, %v567_v37  ;;  %v557_v41 = vld [vmem:[#allocation8 + $0x80] sm:$0xf]  ;;  %v494_v42 = vor.u32 %v622_v40, %v493_v39  ;;  %v638_v43 = vld [vmem:[#allocation8 + $0x84] sm:$0xf0]  ;;  %v621_v44 = vld [vmem:[#allocation8 + $0x4] sm:$0xf] }
  0x2e   :  { %v495_v45 = vld [vmem:[#allocation8 + $0x8] sm:$0xf0]  ;;  %v558_v46 = vor.u32 %v638_v43, %v557_v41  ;;  %v637_v48 = vld [vmem:[#allocation8 + $0x84] sm:$0xf]  ;;  %v104_v51 = vld [vmem:[%s875_s3] sm:$0x3] }
  0x2f   :  { %v498_v47 = vor.u32 %v621_v44, %v495_v45  ;;  %v559_v49 = vld [vmem:[#allocation8 + $0x88] sm:$0xf0]  ;;  %v106_v52 = vperm.slane %v104_v51, 0  ;;  %v107_v53 = vperm.slane %v104_v51, 1  ;;  %v420_v0 = vld [vmem:[#allocation9] sm:$0x3] }
  0x30   :  { %393 = vmatpush.bf16.msrb.mxu0 %v530_v61  ;;  %406 = vmatpush.bf16.msrb.mxu1 %v594_v1  ;;  %v562_v50 = vor.u32 %v637_v48, %v559_v49  ;;  %429 = vst [vmem:[#allocation1] ss:$9 sm:$0xff] %v420_v0  ;;  %v421_v1 = vld [vmem:[#allocation2] sm:$0x1]  ;;  %v198_v3 = vld [vmem:[%s877_s5] sm:$0x3] }
  0x31   :  { %369 = vmatpush.bf16.msra.mxu2 %v510_v19  ;;  %382 = vmatpush.bf16.msra.mxu3 %v574_v20  ;;  %v201_v4 = vperm.slane %v198_v3, 1  ;;  %v200_v8 = vperm.slane %v198_v3, 0  ;;  %s799_s5 = smov [#allocation11]   ;;  %s469_s10 = sshll.u32 %s880_s8, 4  ;;  %vm460_vm3 = vcmask 8192   ;;  %s470_s10 = int_to_ptr.hbm [resolvable:$true] %s469_s10 }
  0x32   :  { %424 = vperm.xlu0 %662, %v421_v1   ;;  %s467_s29 = sshll.u32 %s799_s5, 4  ;;  %s468_s29 = int_to_ptr.vmem [resolvable:$true] %s467_s29 }
  0x34   :  { %394 = vmatpush.bf16.msrb.mxu0 %v522_v9  ;;  %407 = vmatpush.bf16.msrb.mxu1 %v586_v13 }
  0x35   :  { %370 = vmatpush.bf16.msra.mxu2 %v502_v30  ;;  %383 = vmatpush.bf16.msra.mxu3 %v566_v34 }
  0x38   :  { %395 = vmatpush.bf16.msrb.mxu0 %v514_v21  ;;  %408 = vmatpush.bf16.msrb.mxu1 %v578_v22  ;;  %v431_v22 = vld [vmem:[#allocation1 + $0x9] sm:$0xff] }
  0x39   :  { %371 = vmatpush.bf16.msra.mxu2 %v494_v42  ;;  %384 = vmatpush.bf16.msra.mxu3 %v558_v46 }
  0x3c   :  { %396 = vmatpush.bf16.msrb.mxu0 %v506_v35  ;;  %409 = vmatpush.bf16.msrb.mxu1 %v570_v38 }
  0x40   :  { %397 = vmatpush.bf16.msrb.mxu0 %v498_v47  ;;  %410 = vmatpush.bf16.msrb.mxu1 %v562_v50 }
  0x89   :  { %v96_v24 = vpop.permute.xlu0 %95 }
  0x8a   :  { %v99_v25 = vsel %vm98_vm1, %v92_v23, %v96_v24  ;;  %v430_v23 = vld [vmem:[#allocation1] sm:$0xff] }
  0x8b   :  { %v100_v26 = vpack.c.bf16 %v99_v25, %v99_v25 }
  0x8d   :  { %489 = vmatmul.msk.bf16.vlgmr.msra.gmra.mxu0 %vm125_vm2, %v100_v26  ;;  %490 = vmatmul.msk.bf16.vlgmr.msra.gmra.mxu1 %vm125_vm2, %v100_v26 }
  0xa4   :  { %v425_v24 = vpop.permute.xlu0 %424 }
  0xa5   :  { %v427_v26 = vperm.slane %v425_v24, 0 }
 0x10a   :  { %v145_v54 = vpop.f32.mrf.mxu0  ;;  %v158_v55 = vpop.f32.mrf.mxu1 }
 0x10b   :  { %v146_v56 = vadd.f32 %v145_v54, %v106_v52  ;;  %v159_v57 = vadd.f32 %v158_v55, %v107_v53 }
 0x10d   :  { %v162_v58 = vmax.f32 %v146_v56, 0.0  ;;  %v163_v59 = vmax.f32 %v159_v57, 0.0 }
 0x10f   :  { %v164_v60 = vpack.c.bf16 %v162_v58, %v162_v58  ;;  %v165_v61 = vpack.c.bf16 %v163_v59, %v163_v59 }
 0x111   :  { %372 = vmatmul.bf16.vlgmr.msra.gmra.mxu2 %v164_v60  ;;  %385 = vmatmul.bf16.vlgmr.msra.gmra.mxu3 %v165_v61 }
 0x112   :  { %398 = vmatmul.bf16.vlgmr.msrb.gmra.mxu0 %v164_v60  ;;  %411 = vmatmul.bf16.vlgmr.msrb.gmra.mxu1 %v165_v61  ;;  %v147_v62 = vpop.f32.mrf.mxu0  ;;  %v160_v63 = vpop.f32.mrf.mxu1 }
 0x18f   :  { %v399_v5 = vpop.f32.mrf.mxu0  ;;  %v412_v6 = vpop.f32.mrf.mxu1 }
 0x190   :  { %v400_v7 = vadd.f32 %v399_v5, %v201_v4 }
 0x192   :  { %v413_v9 = vadd.f32 %v412_v6, %v400_v7 }
 0x194   :  { %v417_v10 = vmax.f32 %v413_v9, 0.0  ;;  %v373_v11 = vpop.f32.mrf.mxu2  ;;  %v386_v12 = vpop.f32.mrf.mxu3 }
 0x195   :  { %v374_v13 = vadd.f32 %v373_v11, %v200_v8 }
 0x196   :  { %v419_v14 = vpack.c.bf16 %v417_v10, %v417_v10 }
 0x197   :  { %v387_v15 = vadd.f32 %v386_v12, %v374_v13  ;;  %v401_v16 = vpop.f32.mrf.mxu0  ;;  %v414_v17 = vpop.f32.mrf.mxu1 }
 0x198   :  { %454 = vmatpush.bf16.xpose.msrb.mxu3 %v419_v14 }
 0x199   :  { %v416_v18 = vmax.f32 %v387_v15, 0.0 }
 0x19b   :  { %v418_v19 = vpack.c.bf16 %v416_v18, %v416_v18 }
 0x19c   :  { %v375_v20 = vpop.f32.mrf.mxu2  ;;  %v388_v21 = vpop.f32.mrf.mxu3 }
 0x19d   :  { %441 = vmatpush.bf16.xpose.msrb.mxu2 %v418_v19 }
 0x19f   :  { %455 = vmatmul.bf16.vlgmr.msrb.gmra.mxu3 %v431_v22 }
 0x1a4   :  { %442 = vmatmul.bf16.vlgmr.msrb.gmra.mxu2 %v430_v23 }
 0x222   :  { %v456_v25 = vpop.f32.mrf.mxu3 }
 0x227   :  { %v443_v27 = vpop.f32.mrf.mxu2 }
 0x228   :  { %v444_v28 = vadd.f32 %v443_v27, %v427_v26 }
 0x22a   :  { %v457_v29 = vadd.f32 %v456_v25, %v444_v28  ;;  %v458_v30 = vpop.f32.mrf.mxu3 }
 0x22c   :  { %461 = vst.msk [vmem:[#allocation11] sm:$0x1] %vm460_vm3, %v457_v29 }
 0x22d   :  { %472 = dma.vmem_to_hbm [thread:$0]  %s468_s29, 16, %s470_s10, [#allocation5]  }
 0x22f   :  { %v445_v31 = vpop.f32.mrf.mxu2 }
 0x230   :  { %789 = dma.done.wait [#allocation5], 16  }
 0x231   :  { %790 = vsyncadd [#allocation5], 4294967280 }
 0x232   :  { %477 = vsyncpa [#allocation4], 1 }
 0x233   :  { %478 = vsyncpa [#allocation7], 1 }
 0x234   :  { %479 = vsyncpa [#allocation10], 1 }
 0x235   :  { %480 = vsyncpa [#allocation5], 1 }

</bundles_post_ra>
